<compile_context>
chip_gen: v6e
topology: v6e:2x2x1
jax: 0.10.0
libtpu: 0.0.40
codegen_flags: <defaults>
</compile_context>

<pallas_src>
import functools

import jax
import jax.numpy as jnp
from jax.experimental import pallas as pl
from jax.experimental.pallas import tpu as pltpu

# "Parameters" of the module (deterministic, __init__ defaults). `alpha` is an unused
# buffer in forward(); kept here for fidelity.
ALPHA = jnp.array(1.0, dtype=jnp.float32)


# ------------------------------ kernel helpers ------------------------------ #

def _maybe_center(a, center_columns):
    # Column-center over the row axis (axis=1) of a (TB, N, D) slab.
    if center_columns:
        return a - jnp.mean(a, axis=1, keepdims=True)
    return a


def _sq_fro(a):
    # Per-batch squared Frobenius norm of a (TB, N, D) slab -> (TB, 1).
    s = jnp.sum(a * a, axis=2)                      # (TB, N)   lane reduction
    return jnp.sum(s, axis=1, keepdims=True)        # (TB, 1)   sublane reduction


# ----------------------------- Pallas kernels ------------------------------ #

def _xcov_stats_kernel(x_ref, y_ref, wxy_ref, sq_ref, *, center_columns):
    # x_ref, y_ref: (TB, N, D) VMEM tiles; wxy_ref: (TB, D, D); sq_ref: (TB, 2).
    x = _maybe_center(x_ref[...].astype(jnp.float32), center_columns)
    y = _maybe_center(y_ref[...].astype(jnp.float32), center_columns)
    # Batched wx^T @ wy on the MXU (contract over rows N), f32 accumulate.
    wxy_ref[...] = jnp.einsum('bnd,bne->bde', x, y,
                              preferred_element_type=jnp.float32)
    # Squared Frobenius norms ride in otherwise-idle VPU/XLU slots.
    sq_ref[:, 0:1] = _sq_fro(x)
    sq_ref[:, 1:2] = _sq_fro(y)


def _sq_only_kernel(x_ref, y_ref, sq_ref, *, center_columns):
    # no-SVD branch (N == 1): only the per-batch Frobenius norms are needed.
    x = _maybe_center(x_ref[...].astype(jnp.float32), center_columns)
    y = _maybe_center(y_ref[...].astype(jnp.float32), center_columns)
    sq_ref[:, 0:1] = _sq_fro(x)
    sq_ref[:, 1:2] = _sq_fro(y)


# ----------------------------- pallas_call glue ----------------------------- #

def _pick_tiling(B, N, D):
    """Choose (batch-tile, padded batch).

    VMEM footprint per batch element is estimated with layout padding (last dim to a
    multiple of 128 lanes, second-to-last to 8 sublanes) so small-D estimates are not
    8x optimistic.  If the whole batch fits one ~2 MiB grid step we use tb == B and do
    no batch padding at all (block == full array dim).  Otherwise tb is a multiple of 8
    (the sq output block has tb as its sublane dim) and B is zero-padded to tb."""
    lanes = -(-D // 128) * 128
    n_pad = -(-N // 8) * 8
    d_pad = -(-D // 8) * 8
    per_batch = (2 * n_pad * lanes + d_pad * lanes + 128) * 4   # X + Y + wxy + sq
    budget = 2 << 20   # ~2 MiB/step; double-buffered it stays well under v5e's 16 MiB
    tb = max(1, budget // per_batch)
    if tb >= B:
        return B, B
    tb = max(8, (tb // 8) * 8)
    bp = -(-B // tb) * tb
    return tb, bp


def _pad_batch(X, Y, bp):
    B = X.shape[0]
    if bp != B:
        pad = ((0, bp - B), (0, 0), (0, 0))
        X = jnp.pad(X, pad)
        Y = jnp.pad(Y, pad)
    return X, Y


def _xcov_and_sq(X, Y, center_columns):
    B, N, D = X.shape
    tb, bp = _pick_tiling(B, N, D)
    Xp, Yp = _pad_batch(X, Y, bp)
    kernel = functools.partial(_xcov_stats_kernel, center_columns=center_columns)
    wxy, sq = pl.pallas_call(
        kernel,
        out_shape=(jax.ShapeDtypeStruct((bp, D, D), jnp.float32),
                   jax.ShapeDtypeStruct((bp, 2), jnp.float32)),
        grid=(bp // tb,),
        in_specs=[pl.BlockSpec((tb, N, D), lambda b: (b, 0, 0)),
                  pl.BlockSpec((tb, N, D), lambda b: (b, 0, 0))],
        out_specs=(pl.BlockSpec((tb, D, D), lambda b: (b, 0, 0)),
                   pl.BlockSpec((tb, 2), lambda b: (b, 0))),
        compiler_params=pltpu.CompilerParams(dimension_semantics=("parallel",)),
    )(Xp, Yp)
    return wxy[:B], sq[:B]


def _sq_only(X, Y, center_columns):
    B, N, D = X.shape
    tb, bp = _pick_tiling(B, N, D)
    Xp, Yp = _pad_batch(X, Y, bp)
    kernel = functools.partial(_sq_only_kernel, center_columns=center_columns)
    sq = pl.pallas_call(
        kernel,
        out_shape=jax.ShapeDtypeStruct((bp, 2), jnp.float32),
        grid=(bp // tb,),
        in_specs=[pl.BlockSpec((tb, N, D), lambda b: (b, 0, 0)),
                  pl.BlockSpec((tb, N, D), lambda b: (b, 0, 0))],
        out_specs=pl.BlockSpec((tb, 2), lambda b: (b, 0)),
        compiler_params=pltpu.CompilerParams(dimension_semantics=("parallel",)),
    )(Xp, Yp)
    return sq[:B]


# ------------------------------ forward wrapper ----------------------------- #

def linear_measure_forward(X, Y, *, center_columns=True, dim_matching='zero_pad',
                           reduction='mean', no_svd=True):
    if X.ndim != 3 or Y.ndim != 3 or X.shape[:-1] != Y.shape[:-1]:
        raise ValueError(f'Expected matching 3D inputs, got {X.shape} and {Y.shape}.')
    if X.shape[-1] != Y.shape[-1]:
        if dim_matching is None or dim_matching == 'none':
            raise ValueError('Dimension mismatch with dim_matching disabled.')
        elif dim_matching == 'zero_pad':
            size_diff = Y.shape[-1] - X.shape[-1]
            if size_diff < 0:
                raise ValueError('zero_pad expects X last dim <= Y last dim.')
            X = jnp.pad(X, ((0, 0), (0, 0), (0, size_diff)))
        elif dim_matching == 'pca':
            raise NotImplementedError
        else:
            raise ValueError(f'Unrecognized dimension matching {dim_matching}')

    X = X.astype(jnp.float32)
    Y = Y.astype(jnp.float32)
    B, N, D = X.shape

    if no_svd and N == 1:
        sq = _sq_only(X, Y, center_columns)
        norms = (jnp.sqrt(sq[:, 0]) - jnp.sqrt(sq[:, 1])) ** 2
    else:
        wxy, sq = _xcov_and_sq(X, Y, center_columns)
        # Batched small SVD has no Pallas TPU equivalent; only singular values needed.
        s = jnp.linalg.svd(jax.lax.stop_gradient(wxy), compute_uv=False)
        nuc = jnp.sum(s, axis=-1)
        # ||wx U - wy V||_F^2 = ||wx||_F^2 + ||wy||_F^2 - 2 * nuclear_norm(wxy)
        norms = jnp.sqrt(jnp.maximum(sq[:, 0] + sq[:, 1] - 2.0 * nuc, 0.0))

    if reduction == 'mean':
        return jnp.mean(norms)
    elif reduction == 'sum':
        return jnp.sum(norms)
    elif reduction == 'none' or reduction is None:
        return norms
    else:
        raise ValueError(f'Unrecognized reduction {reduction}')


# ------------------------------ pure-JAX reference --------------------------- #

def linear_measure_ref(X, Y, *, center_columns=True, no_svd=True):
    # Mirrors the torch module literally (explicit projection path).
    if X.shape[-1] != Y.shape[-1]:
        X = jnp.pad(X, ((0, 0), (0, 0), (0, Y.shape[-1] - X.shape[-1])))
    X = X.astype(jnp.float32)
    Y = Y.astype(jnp.float32)
    wx = X - jnp.mean(X, axis=1, keepdims=True) if center_columns else X
    wy = Y - jnp.mean(Y, axis=1, keepdims=True) if center_columns else Y
    if no_svd and X.shape[1] == 1:
        xn = jnp.sqrt(jnp.sum(wx * wx, axis=(1, 2)))
        yn = jnp.sqrt(jnp.sum(wy * wy, axis=(1, 2)))
        norms = (xn - yn) ** 2
    else:
        wxy = jnp.einsum('bnd,bne->bde', wx, wy)
        U, _, Vt = jnp.linalg.svd(wxy, full_matrices=False)
        V = jnp.swapaxes(Vt, 1, 2)
        diff = jnp.einsum('bnd,bde->bne', wx, U) - jnp.einsum('bnd,bde->bne', wy, V)
        norms = jnp.sqrt(jnp.sum(diff * diff, axis=(1, 2)))
    return jnp.mean(norms)


# ----------------------------------- main ----------------------------------- #

if __name__ == "__main__":
    key = jax.random.PRNGKey(0)
    k1, k2, k3, k4 = jax.random.split(key, 4)

    # Main path: B=2, N=8 rows, X has 12 features (zero-padded to 16), Y has 16.
    X = jax.random.normal(k1, (2, 8, 12), dtype=jnp.float32)
    Y = jax.random.normal(k2, (2, 8, 16), dtype=jnp.float32)

    out = jax.block_until_ready(linear_measure_forward(X, Y))
    ref = jax.block_until_ready(linear_measure_ref(X, Y))
    assert jnp.allclose(out, ref, rtol=1e-3, atol=1e-3), (out, ref)

    # Per-batch ('none') reduction is supported by the fused design.
    out_none = jax.block_until_ready(linear_measure_forward(X, Y, reduction='none'))
    assert out_none.shape == (2,)
    assert jnp.allclose(jnp.mean(out_none), ref, rtol=1e-3, atol=1e-3), (out_none, ref)

    # no-SVD branch (N == 1); center_columns=False so the result is non-trivial.
    X1 = jax.random.normal(k3, (2, 1, 10), dtype=jnp.float32)
    Y1 = jax.random.normal(k4, (2, 1, 16), dtype=jnp.float32)
    out1 = jax.block_until_ready(linear_measure_forward(X1, Y1, center_columns=False))
    ref1 = jax.block_until_ready(linear_measure_ref(X1, Y1, center_columns=False))
    assert jnp.allclose(out1, ref1, rtol=1e-3, atol=1e-3), (out1, ref1)

    print("KERNEL_OK")
</pallas_src>

<mosaic_0001>
module attributes {stable_mosaic.version = 11 : i64} {
  func.func @_xcov_stats_kernel(%arg0: i32, %arg1: memref<2x8x16xf32, #tpu.memory_space<vmem>>, %arg2: memref<2x8x16xf32, #tpu.memory_space<vmem>>, %arg3: memref<2x16x16xf32, #tpu.memory_space<vmem>>, %arg4: memref<2x2xf32, #tpu.memory_space<vmem>>) attributes {dimension_semantics = [#tpu.dimension_semantics<parallel>], iteration_bounds = array<i64: 1>, scalar_prefetch = 0 : i64, scratch_operands = 0 : i64, tpu.core_type = #tpu.core_type<tc>, window_params = [{transform_indices = @transform_0, window_bounds = array<i64: 2, 8, 16>}, {transform_indices = @transform_1, window_bounds = array<i64: 2, 8, 16>}, {transform_indices = @transform_2, window_bounds = array<i64: 2, 16, 16>}, {transform_indices = @transform_3, window_bounds = array<i64: 2, 2>}]} {
    %c0 = arith.constant 0 : index
    %c0_0 = arith.constant 0 : index
    %c0_1 = arith.constant 0 : index
    %0 = vector.load %arg1[%c0, %c0_0, %c0_1] : memref<2x8x16xf32, #tpu.memory_space<vmem>>, vector<2x8x16xf32>
    %cst = arith.constant dense<0.000000e+00> : vector<2x16xf32>
    %1 = vector.multi_reduction <add>, %0, %cst [1] : vector<2x8x16xf32> to vector<2x16xf32>
    %2 = vector.shape_cast %1 : vector<2x16xf32> to vector<2x1x16xf32>
    %cst_2 = arith.constant 8.000000e+00 : f32
    %3 = vector.broadcast %cst_2 : f32 to vector<2x1x16xf32>
    %4 = arith.divf %2, %3 : vector<2x1x16xf32>
    %5 = vector.broadcast %4 : vector<2x1x16xf32> to vector<2x8x16xf32>
    %6 = arith.subf %0, %5 : vector<2x8x16xf32>
    %c0_3 = arith.constant 0 : index
    %c0_4 = arith.constant 0 : index
    %c0_5 = arith.constant 0 : index
    %7 = vector.load %arg2[%c0_3, %c0_4, %c0_5] : memref<2x8x16xf32, #tpu.memory_space<vmem>>, vector<2x8x16xf32>
    %cst_6 = arith.constant dense<0.000000e+00> : vector<2x16xf32>
    %8 = vector.multi_reduction <add>, %7, %cst_6 [1] : vector<2x8x16xf32> to vector<2x16xf32>
    %9 = vector.shape_cast %8 : vector<2x16xf32> to vector<2x1x16xf32>
    %cst_7 = arith.constant 8.000000e+00 : f32
    %10 = vector.broadcast %cst_7 : f32 to vector<2x1x16xf32>
    %11 = arith.divf %9, %10 : vector<2x1x16xf32>
    %12 = vector.broadcast %11 : vector<2x1x16xf32> to vector<2x8x16xf32>
    %13 = arith.subf %7, %12 : vector<2x8x16xf32>
    "tpu.trace_start"() <{level = 10 : i32, message = "bnd,bne->bde"}> : () -> ()
    %cst_8 = arith.constant dense<0.000000e+00> : vector<2x16x16xf32>
    %14 = tpu.matmul %6, %13, %cst_8 {dimension_numbers = #tpu.dot_dimension_numbers<[1], [1], [2], [2], [0, 0, 0, 2, 1, 2], [0], [0]>} : vector<2x8x16xf32>, vector<2x8x16xf32>, vector<2x16x16xf32> -> vector<2x16x16xf32>
    "tpu.trace_stop"() : () -> ()
    %c0_9 = arith.constant 0 : index
    %c0_10 = arith.constant 0 : index
    %c0_11 = arith.constant 0 : index
    %15 = vector.load %arg3[%c0_9, %c0_10, %c0_11] : memref<2x16x16xf32, #tpu.memory_space<vmem>>, vector<2x16x16xf32>
    tpu.vector_store %arg3[%c0_9, %c0_10, %c0_11], %14 {strides = array<i32>} : memref<2x16x16xf32, #tpu.memory_space<vmem>>, vector<2x16x16xf32>,
    %16 = arith.mulf %6, %6 : vector<2x8x16xf32>
    %cst_12 = arith.constant dense<0.000000e+00> : vector<2x8xf32>
    %17 = vector.multi_reduction <add>, %16, %cst_12 [2] : vector<2x8x16xf32> to vector<2x8xf32>
    %cst_13 = arith.constant dense<0.000000e+00> : vector<2xf32>
    %18 = vector.multi_reduction <add>, %17, %cst_13 [1] : vector<2x8xf32> to vector<2xf32>
    %19 = vector.shape_cast %18 : vector<2xf32> to vector<2x1xf32>
    %c0_14 = arith.constant 0 : index
    %c0_15 = arith.constant 0 : index
    %20 = vector.load %arg4[%c0_14, %c0_15] : memref<2x2xf32, #tpu.memory_space<vmem>>, vector<2x1xf32>
    tpu.vector_store %arg4[%c0_14, %c0_15], %19 {strides = array<i32>} : memref<2x2xf32, #tpu.memory_space<vmem>>, vector<2x1xf32>,
    %21 = arith.mulf %13, %13 : vector<2x8x16xf32>
    %cst_16 = arith.constant dense<0.000000e+00> : vector<2x8xf32>
    %22 = vector.multi_reduction <add>, %21, %cst_16 [2] : vector<2x8x16xf32> to vector<2x8xf32>
    %cst_17 = arith.constant dense<0.000000e+00> : vector<2xf32>
    %23 = vector.multi_reduction <add>, %22, %cst_17 [1] : vector<2x8xf32> to vector<2xf32>
    %24 = vector.shape_cast %23 : vector<2xf32> to vector<2x1xf32>
    %c0_18 = arith.constant 0 : index
    %c1 = arith.constant 1 : index
    %25 = vector.load %arg4[%c0_18, %c1] : memref<2x2xf32, #tpu.memory_space<vmem>>, vector<2x1xf32>
    tpu.vector_store %arg4[%c0_18, %c1], %24 {strides = array<i32>} : memref<2x2xf32, #tpu.memory_space<vmem>>, vector<2x1xf32>,
    return
  }
  func.func @transform_0(%arg0: i32) -> (i32, i32, i32) {
    %c0_i32 = arith.constant 0 : i32
    %c0_i32_0 = arith.constant 0 : i32
    %c0_i32_1 = arith.constant 0 : i32
    return %arg0, %c0_i32, %c0_i32_0 : i32, i32, i32
  }
  func.func @transform_1(%arg0: i32) -> (i32, i32, i32) {
    %c0_i32 = arith.constant 0 : i32
    %c0_i32_0 = arith.constant 0 : i32
    %c0_i32_1 = arith.constant 0 : i32
    return %arg0, %c0_i32, %c0_i32_0 : i32, i32, i32
  }
  func.func @transform_2(%arg0: i32) -> (i32, i32, i32) {
    %c0_i32 = arith.constant 0 : i32
    %c0_i32_0 = arith.constant 0 : i32
    %c0_i32_1 = arith.constant 0 : i32
    return %arg0, %c0_i32, %c0_i32_0 : i32, i32, i32
  }
  func.func @transform_3(%arg0: i32) -> (i32, i32) {
    %c0_i32 = arith.constant 0 : i32
    %c0_i32_0 = arith.constant 0 : i32
    return %arg0, %c0_i32 : i32, i32
  }
}

</mosaic_0001>

<bundles_post_ra>
// kernel: tpu_custom_call.1
= control target key start
LH: loop header
LB: loop body
LE: loop exit
PB: predicated region body
PF: predicated region fallthrough
CT: control target
= control target key end

     0   :  { %9 = vsyncpa [#allocation3], 0  ;;  %s576_s0 = inlined_call_operand.hbm [shape: f32[2,8,16], index: 0, kind: input, shape index: {}]   ;;  %s577_s1 = inlined_call_operand.hbm [shape: f32[2,8,16], index: 1, kind: input, shape index: {}]   ;;  %s578_s2 = inlined_call_operand.hbm [shape: f32[2,16,16], index: 2, kind: output, shape index: {0}]   ;;  %s579_s3 = inlined_call_operand.hbm [shape: f32[2,2], index: 3, kind: output, shape index: {1}]  }
   0x1   :  { %10 = vsyncpa [#allocation6], 0 }
   0x2   :  { %11 = vsyncpa [#allocation4], 0 }
   0x3   :  { %12 = vsyncpa [#allocation9], 0  ;;  %s517_s12 = smov [#allocation2]  }
   0x4   :  { %s18_s13 = sshll.u32 %s517_s12, 4  ;;  %s19_s13 = int_to_ptr.vmem [resolvable:$true] %s18_s13 }
   0x5   :  { %s437_s14 = scalar_lea.vmem %s19_s13, 256  ;;  %p442_p1 = scmp.lt.s32.totalorder %s19_s13, %s19_s13 }
   0x6   :  { %p438_p0 = scmp.ne.s32.totalorder %s19_s13, %s437_s14  ;;  %p443_p2 = scmp.lt.s32.totalorder %s437_s14, %s437_s14 }
   0x8   :  { %p444_p3 = por %p443_p2, %p442_p1 }
   0xa   :  { %p445_p4 = pnand %p444_p3, %p438_p0 }
   0xc   :  { %448 = shalt.err (!%p445_p4)
}
   0xd   :  { %s518_s15 = smov 128   ;;  %s519_s16 = smov 8  }
   0xe   :  { %24 = dma.hbm_to_vmem [thread:$0]  %s576_s0, 256, %s19_s13, [#allocation3], %s518_s15, %s518_s15, %s519_s16  }
   0xf   :  { %s520_s19 = smov [#allocation5]  }
  0x10   :  { %s30_s20 = sshll.u32 %s520_s19, 4  ;;  %s31_s20 = int_to_ptr.vmem [resolvable:$true] %s30_s20 }
  0x11   :  { %s457_s21 = scalar_lea.vmem %s31_s20, 256  ;;  %p462_p6 = scmp.lt.s32.totalorder %s31_s20, %s31_s20 }
  0x12   :  { %p458_p5 = scmp.ne.s32.totalorder %s31_s20, %s457_s21  ;;  %p463_p7 = scmp.lt.s32.totalorder %s457_s21, %s457_s21 }
  0x14   :  { %p464_p8 = por %p463_p7, %p462_p6 }
  0x16   :  { %p465_p9 = pnand %p464_p8, %p458_p5 }
  0x18   :  { %468 = shalt.err (!%p465_p9)
}
  0x19   :  { %36 = dma.hbm_to_vmem [thread:$0]  %s577_s1, 256, %s31_s20, [#allocation6], %s518_s15, %s518_s15, %s519_s16  }
  0x1a   :  { %509 = dma.done.wait [#allocation3], 256  }
  0x1b   :  { %510 = vsyncadd [#allocation3], 4294967040 }
  0x1c   :  { %511 = dma.done.wait [#allocation6], 256  }
  0x1d   :  { %512 = vsyncadd [#allocation6], 4294967040  ;;  %vm45_vm0 = vcmask 130048   ;;  %v43_v0 = vld [vmem:[#allocation2] sm:$0xff]  ;;  %v44_v1 = vld [vmem:[#allocation2 + $0x8] sm:$0xff]  ;;  %vm117_vm1 = vcmask 64512   ;;  %v326_v50 = vlaneseq }
  0x1e   :  { %v66_v2 = vld [vmem:[#allocation5 + $0x8] sm:$0xff]  ;;  %v46_v3 = vsel %vm45_vm0, %v43_v0, 0.0  ;;  %v53_v4 = vsel %vm45_vm0, %v44_v1, 0.0  ;;  %v65_v6 = vld [vmem:[#allocation5] sm:$0xff]  ;;  %vm336_vm2 = vcmask 1041409   ;;  %vm339_vm3 = vcmask 58368  }
  0x1f   :  { %v74_v5 = vsel %vm45_vm0, %v66_v2, 0.0  ;;  %v47_v7 = vrot.slane %v46_v3, 4  ;;  %v54_v8 = vrot.slane %v53_v4, 4  ;;  %v67_v10 = vsel %vm45_vm0, %v65_v6, 0.0  ;;  %s521_s0 = smov [#allocation7]   ;;  %s522_s24 = smov [#allocation8]  }
  0x20   :  { %v75_v9 = vrot.slane %v74_v5, 4  ;;  %v68_v11 = vrot.slane %v67_v10, 4  ;;  %v327_v52 = vand.u32 127, %v326_v50  ;;  %v329_v53 = vshrl.u32 %v326_v50, 7  ;;  %s375_s1 = sshll.u32 %s521_s0, 4  ;;  %s388_s25 = sshll.u32 %s522_s24, 4  ;;  %s376_s1 = int_to_ptr.vmem [resolvable:$true] %s375_s1  ;;  %s389_s25 = int_to_ptr.vmem [resolvable:$true] %s388_s25 }
  0x21   :  { %v48_v12 = vadd.f32 %v47_v7, %v46_v3  ;;  %v55_v13 = vadd.f32 %v54_v8, %v53_v4  ;;  %vm343_vm4 = vcmask 1024   ;;  %vm368_vm5 = vcmask 9224   ;;  %s469_s26 = scalar_lea.vmem %s376_s1, 512  ;;  %p474_p11 = scmp.lt.s32.totalorder %s376_s1, %s376_s1 }
  0x22   :  { %v76_v14 = vadd.f32 %v75_v9, %v74_v5  ;;  %v69_v15 = vadd.f32 %v68_v11, %v67_v10  ;;  %v330_v55 = vsub.s32 %v327_v52, %v329_v53  ;;  %p470_p10 = scmp.ne.s32.totalorder %s376_s1, %s469_s26  ;;  %p475_p12 = scmp.lt.s32.totalorder %s469_s26, %s469_s26 }
  0x23   :  { %v49_v16 = vrot.slane %v48_v12, 2  ;;  %v56_v17 = vrot.slane %v55_v13, 2 }
  0x24   :  { %v77_v18 = vrot.slane %v76_v14, 2  ;;  %v70_v19 = vrot.slane %v69_v15, 2  ;;  %p476_p13 = por %p475_p12, %p474_p11 }
  0x25   :  { %v50_v20 = vadd.f32 %v49_v16, %v48_v12  ;;  %v57_v21 = vadd.f32 %v56_v17, %v55_v13 }
  0x26   :  { %v78_v22 = vadd.f32 %v77_v18, %v76_v14  ;;  %v71_v23 = vadd.f32 %v70_v19, %v69_v15  ;;  %p477_p0 = pnand %p476_p13, %p470_p10 }
  0x27   :  { %v51_v24 = vrot.slane %v50_v20, 1  ;;  %v58_v25 = vrot.slane %v57_v21, 1 }
  0x28   :  { %v79_v26 = vrot.slane %v78_v22, 1  ;;  %v72_v27 = vrot.slane %v71_v23, 1 }
  0x29   :  { %v52_v28 = vadd.f32 %v51_v24, %v50_v20  ;;  %v59_v29 = vadd.f32 %v58_v25, %v57_v21 }
  0x2a   :  { %v80_v30 = vadd.f32 %v79_v26, %v78_v22  ;;  %v73_v31 = vadd.f32 %v72_v27, %v71_v23 }
  0x2b   :  { %v61_v32 = vmul.f32 0.125, %v52_v28  ;;  %v62_v33 = vmul.f32 0.125, %v59_v29 }
  0x2c   :  { %v82_v34 = vmul.f32 0.125, %v80_v30  ;;  %v81_v35 = vmul.f32 0.125, %v73_v31 }
  0x2d   :  { %v63_v36 = vsub.f32 %v43_v0, %v61_v32  ;;  %v64_v37 = vsub.f32 %v44_v1, %v62_v33 }
  0x2e   :  { %v84_v38 = vsub.f32 %v66_v2, %v82_v34  ;;  %v83_v39 = vsub.f32 %v65_v6, %v81_v35 }
  0x2f   :  { %85 = vxpose.xlu0.b32.start.end [1/1] (short) (narrow) %v63_v36, 16  ;;  %v316_v40 = vmul.f32 %v63_v36, %v63_v36  ;;  %v317_v41 = vmul.f32 %v64_v37, %v64_v37 }
  0x30   :  { %417 = vmatprep.subr.mxu1 %v84_v38  ;;  %412 = vmatprep.subr.mxu0 %v83_v39  ;;  %v345_v44 = vmul.f32 %v83_v39, %v83_v39  ;;  %v346_v46 = vmul.f32 %v84_v38, %v84_v38 }
  0x31   :  { %418 = vmatpush3.msra.mxu1 %v84_v38  ;;  %v318_v42 = vsel %vm45_vm0, %v316_v40, 0.0  ;;  %413 = vmatpush3.msra.mxu0 %v83_v39  ;;  %v321_v43 = vsel %vm45_vm0, %v317_v41, 0.0 }
  0x32   :  { %319 = vadd.xlane.f32.xlu1 %v318_v42  ;;  %v347_v45 = vsel %vm45_vm0, %v345_v44, 0.0  ;;  %v350_v47 = vsel %vm45_vm0, %v346_v46, 0.0 }
  0x34   :  { %199 = vxpose.xlu0.b32.start.end [1/1] (short) (narrow) %v64_v37, 16 }
  0x36   :  { %322 = vadd.xlane.f32.xlu1 %v321_v43 }
  0x3a   :  { %348 = vadd.xlane.f32.xlu1 %v347_v45 }
  0x65   :  { %351 = vadd.xlane.f32.xlu0 %v350_v47 }
  0xab   :  { %v101_v48 = vpop.trf.xlu0 }
  0xac   :  { %414 = vmatprep.mubr.msk.f32.mxu0 %vm117_vm1, %v101_v48 }
  0xaf   :  { %v102_v49 = vpop.trf.xlu0 }
  0xb0   :  { %415 = vmatmul.mubr.msk.f32.vlgmr.msra.gmra.mxu0 %vm117_vm1, %v102_v49 }
  0xb3   :  { %v215_v51 = vpop.trf.xlu0 }
  0xb4   :  { %419 = vmatprep.mubr.msk.f32.mxu1 %vm117_vm1, %v215_v51 }
  0xb7   :  { %v216_v54 = vpop.trf.xlu0 }
  0xb8   :  { %420 = vmatmul.mubr.msk.f32.vlgmr.msra.gmra.mxu1 %vm117_vm1, %v216_v54 }
  0xbb   :  { %v320_v56 = vpop.xlane.xlu1 %319 }
  0xbc   :  { %v331_v57 = vrot.slane %v320_v56, %v330_v55 }
  0xbf   :  { %v323_v58 = vpop.xlane.xlu1 %322 }
  0xc0   :  { %v335_v59 = vrot.slane %v323_v58, %v330_v55 }
  0xc2   :  { %v337_v60 = vsel %vm336_vm2, %v335_v59, %v331_v57 }
  0xc3   :  { %v340_v61 = vsel %vm339_vm3, %v337_v60, 0.0  ;;  %v349_v62 = vpop.xlane.xlu1 %348 }
  0xc4   :  { %341 = vadd.xlane.f32.xlu1 %v340_v61  ;;  %v358_v63 = vrot.slane %v349_v62, %v330_v55 }
  0xee   :  { %v352_v0 = vpop.xlane.xlu0 %351 }
  0xef   :  { %v362_v1 = vrot.slane %v352_v0, %v330_v55 }
  0xf1   :  { %v363_v2 = vsel %vm336_vm2, %v362_v1, %v358_v63 }
  0xf2   :  { %v365_v3 = vsel %vm339_vm3, %v363_v2, 0.0 }
  0xf3   :  { %366 = vadd.xlane.f32.xlu1 %v365_v3 }
 0x14d   :  { %v342_v4 = vpop.xlane.xlu1 %341 }
 0x14e   :  { %344 = vst.msk [vmem:[#allocation8] sm:$0x3] %vm343_vm4, %v342_v4 }
 0x170   :  { %v416_v5 = vpop.f32.mrf.mxu0 }
 0x171   :  { %313 = vst.msk [vmem:[#allocation7 + $0x8] sm:$0xff] %vm45_vm0, %v416_v5 }
 0x172   :  { %v190_v6 = vpop.f32.mrf.mxu0 }
 0x173   :  { %312 = vst.msk [vmem:[#allocation7] sm:$0xff] %vm45_vm0, %v190_v6 }
 0x178   :  { %v421_v7 = vpop.f32.mrf.mxu1 }
 0x179   :  { %315 = vst.msk [vmem:[#allocation7 + $0x18] sm:$0xff] %vm45_vm0, %v421_v7 }
 0x17a   :  { %v303_v8 = vpop.f32.mrf.mxu1 }
 0x17b   :  { %314 = vst.msk [vmem:[#allocation7 + $0x10] sm:$0xff] %vm45_vm0, %v303_v8 }
 0x17c   :  { %v367_v9 = vpop.xlane.xlu1 %366 }
 0x17d   :  { %480 = shalt.err (!%p477_p0)
}
 0x17e   :  { %381 = dma.vmem_to_hbm [thread:$0]  %s376_s1, 512, %s578_s2, [#allocation4], %s518_s15, %s518_s15, %s519_s16   ;;  %369 = vst.msk [vmem:[#allocation8] sm:$0x3] %vm368_vm5, %v367_v9 }
 0x17f   :  { %s489_s29 = scalar_lea.vmem %s389_s25, 32  ;;  %p494_p2 = scmp.lt.s32.totalorder %s389_s25, %s389_s25 }
 0x180   :  { %p490_p1 = scmp.ne.s32.totalorder %s389_s25, %s489_s29  ;;  %p495_p3 = scmp.lt.s32.totalorder %s489_s29, %s489_s29 }
 0x182   :  { %p496_p4 = por %p495_p3, %p494_p2 }
 0x184   :  { %p497_p5 = pnand %p496_p4, %p490_p1 }
 0x186   :  { %500 = shalt.err (!%p497_p5)
}
 0x187   :  { %391 = dma.vmem_to_hbm [thread:$0]  %s389_s25, 32, %s579_s3, [#allocation9]  }
 0x188   :  { %513 = dma.done.wait [#allocation4], 512  }
 0x189   :  { %514 = vsyncadd [#allocation4], 4294966784 }
 0x18a   :  { %515 = dma.done.wait [#allocation9], 32  }
 0x18b   :  { %516 = vsyncadd [#allocation9], 4294967264 }
 0x18c   :  { %398 = vsyncpa [#allocation3], 1 }
 0x18d   :  { %399 = vsyncpa [#allocation6], 1 }
 0x18e   :  { %400 = vsyncpa [#allocation4], 1 }
 0x18f   :  { %401 = vsyncpa [#allocation9], 1 }

</bundles_post_ra>
